<compile_context>
chip_gen: v6e
topology: v6e:2x2x1
jax: 0.10.0
libtpu: 0.0.40
codegen_flags: <defaults>
</compile_context>

<pallas_src>
import jax
import jax.numpy as jnp
from jax.experimental import pallas as pl
from jax.experimental.pallas import tpu as pltpu

_LANE = 128


def _round_up(x, m):
    return ((x + m - 1) // m) * m


def _sublane_multiple(dtype):
    # Min sublane packing multiple: 8 for 4-byte, 16 for 2-byte, 32 for 1-byte.
    return max(8, 32 // jnp.dtype(dtype).itemsize)


def _softmax_quantizer_v2_kernel(s_ref, x_ref, o_ref):
    scale = s_ref[0]        # 127 / th   (f32 scalar in SMEM)
    inv_scale = s_ref[1]    # th / 127   (f32 scalar in SMEM)
    x = x_ref[...].astype(jnp.float32)
    q = jnp.round(jnp.clip(x * scale, 0.0, 127.0))
    o_ref[...] = (q * inv_scale).astype(o_ref.dtype)


def _choose_tile_rows(rows, target_rows, sub):
    """Largest sublane-aligned tile <= target_rows; keep >=2 grid steps when
    the array allows it (so "parallel" can split across v7x's two TCs)."""
    rows_aligned = _round_up(rows, sub)
    if rows_aligned <= 2 * sub:
        return rows_aligned
    tr = min(target_rows, _round_up(pl.cdiv(rows_aligned, 2), sub))
    return max(tr, sub)


def softmax_quantizer_v2(x, th=0.5, block_bytes=4 * 1024 * 1024,
                         out_dtype=jnp.float32):
    """Elementwise fake-quantizer. out_dtype=float32 matches x.float() in torch."""
    orig_shape = x.shape
    flat = x.reshape(-1)
    n = flat.shape[0]

    in_itemsize = jnp.dtype(x.dtype).itemsize
    out_itemsize = jnp.dtype(out_dtype).itemsize
    sub = max(_sublane_multiple(x.dtype), _sublane_multiple(out_dtype))

    # Lane-align the flat length. For n % 128 == 0 (the common case) the 2-D
    # reshape below is a free bitcast. The unaligned path pays extra full-array
    # HBM passes for pad + final prefix slice.
    # TODO(synk): a zero-copy unaligned path needs manual DMA (memory_space=ANY
    # with exact-length chunk copies); not worth it for this elementwise op yet.
    pad = (-n) % _LANE
    if pad:
        flat = jnp.pad(flat, (0, pad))
    rows = (n + pad) // _LANE
    x2d = flat.reshape(rows, _LANE)            # contiguous -> free bitcast

    # ~block_bytes of f32 per block; partial last block is masked by Pallas.
    target_rows = max(sub, (block_bytes // (_LANE * 4)) // sub * sub)
    tr = _choose_tile_rows(rows, target_rows, sub)
    grid = (pl.cdiv(rows, tr),)

    # Double-buffered input + output blocks plus headroom for Mosaic internal
    # scratch; capped well under v7x's 64 MiB per-TensorCore physical VMEM.
    block_elems = tr * _LANE
    vmem_limit = 2 * block_elems * (in_itemsize + out_itemsize) + (8 << 20)
    vmem_limit = max(16 << 20, min(vmem_limit, 48 << 20))

    th_f = jnp.asarray(th, dtype=jnp.float32)
    scales = jnp.stack([jnp.float32(127.0) / th_f,
                        th_f / jnp.float32(127.0)]).astype(jnp.float32)

    out2d = pl.pallas_call(
        _softmax_quantizer_v2_kernel,
        out_shape=jax.ShapeDtypeStruct((rows, _LANE), out_dtype),
        grid_spec=pltpu.PrefetchScalarGridSpec(
            num_scalar_prefetch=0,
            grid=grid,
            in_specs=[
                pl.BlockSpec(memory_space=pltpu.MemorySpace.SMEM),  # [scale, inv]
                pl.BlockSpec((tr, _LANE), lambda i: (i, 0)),
            ],
            out_specs=pl.BlockSpec((tr, _LANE), lambda i: (i, 0)),
        ),
        compiler_params=pltpu.CompilerParams(
            dimension_semantics=("parallel",),
            vmem_limit_bytes=vmem_limit,
        ),
        cost_estimate=pl.CostEstimate(
            flops=4 * n,
            transcendentals=0,
            bytes_accessed=n * in_itemsize + n * out_itemsize,
        ),
    )(scales, x2d)

    out_flat = out2d.reshape(-1)
    if pad:
        out_flat = out_flat[:n]
    return out_flat.reshape(orig_shape)


def _reference(x, th=0.5):
    # PyTorch evaluation order: x*127/th, clamp, round, /127, *th.
    x = x.astype(jnp.float32)
    return jnp.round(jnp.clip(x * 127.0 / th, 0.0, 127.0)) / 127.0 * th


if __name__ == "__main__":
    key = jax.random.PRNGKey(0)

    # 1) NCHW-style activation, lane-aligned element count (single block).
    x = jax.random.uniform(key, (2, 4, 16, 16), dtype=jnp.float32,
                           minval=-0.25, maxval=0.75)
    y = jax.block_until_ready(softmax_quantizer_v2(x, th=0.5))
    assert y.shape == x.shape
    assert y.dtype == jnp.float32
    assert jnp.allclose(y, _reference(x, th=0.5), atol=1e-6), \
        "mismatch vs reference (aligned, single block)"

    # 2) Larger aligned input that exercises a multi-step grid (grid=(2,)).
    xb = jax.random.uniform(jax.random.PRNGKey(0), (2, 8, 64, 128),
                            dtype=jnp.float32, minval=-0.25, maxval=0.75)
    yb = jax.block_until_ready(softmax_quantizer_v2(xb, th=0.5))
    assert yb.shape == xb.shape
    assert jnp.allclose(yb, _reference(xb, th=0.5), atol=1e-6), \
        "mismatch vs reference (aligned, multi block)"

    # 3) Awkward non-lane-aligned shape (pad + masked partial final block) and
    #    a different th value (no recompile of the kernel body math).
    x2 = jax.random.uniform(jax.random.PRNGKey(0), (3, 5, 7, 8),
                            dtype=jnp.float32, minval=-0.5, maxval=1.0)
    y2 = jax.block_until_ready(softmax_quantizer_v2(x2, th=0.75))
    assert y2.shape == x2.shape
    assert jnp.allclose(y2, _reference(x2, th=0.75), atol=1e-6), \
        "mismatch vs reference (padded)"

    print("KERNEL_OK")
</pallas_src>

<mosaic_0001>
module attributes {stable_mosaic.version = 11 : i64} {
  func.func @_softmax_quantizer_v2_kernel(%arg0: i32, %arg1: memref<2xf32, #tpu.memory_space<smem>>, %arg2: memref<16x128xf32, #tpu.memory_space<vmem>>, %arg3: memref<16x128xf32, #tpu.memory_space<vmem>>) attributes {dimension_semantics = [#tpu.dimension_semantics<parallel>], iteration_bounds = array<i64: 1>, scalar_prefetch = 0 : i64, scratch_operands = 0 : i64, tpu.core_type = #tpu.core_type<tc>, window_params = [{transform_indices = @transform_0, window_bounds = array<i64: 2>}, {transform_indices = @transform_1, window_bounds = array<i64: 16, 128>}, {transform_indices = @transform_2, window_bounds = array<i64: 16, 128>}]} {
    %c0 = arith.constant 0 : index
    %0 = memref.load %arg1[%c0] : memref<2xf32, #tpu.memory_space<smem>>
    %c1 = arith.constant 1 : index
    %1 = memref.load %arg1[%c1] : memref<2xf32, #tpu.memory_space<smem>>
    %c0_0 = arith.constant 0 : index
    %c0_1 = arith.constant 0 : index
    %2 = vector.load %arg2[%c0_0, %c0_1] : memref<16x128xf32, #tpu.memory_space<vmem>>, vector<16x128xf32>
    %3 = vector.broadcast %0 : f32 to vector<16x128xf32>
    %4 = arith.mulf %2, %3 : vector<16x128xf32>
    %cst = arith.constant 0.000000e+00 : f32
    %cst_2 = arith.constant 1.270000e+02 : f32
    %5 = vector.broadcast %cst : f32 to vector<16x128xf32>
    %6 = arith.maximumf %5, %4 : vector<16x128xf32>
    %7 = vector.broadcast %cst_2 : f32 to vector<16x128xf32>
    %8 = arith.minimumf %7, %6 : vector<16x128xf32>
    %9 = math.roundeven %8 : vector<16x128xf32>
    %10 = vector.broadcast %1 : f32 to vector<16x128xf32>
    %11 = arith.mulf %9, %10 : vector<16x128xf32>
    %c0_3 = arith.constant 0 : index
    %c0_4 = arith.constant 0 : index
    %12 = vector.load %arg3[%c0_3, %c0_4] : memref<16x128xf32, #tpu.memory_space<vmem>>, vector<16x128xf32>
    tpu.vector_store %arg3[%c0_3, %c0_4], %11 {strides = array<i32>} : memref<16x128xf32, #tpu.memory_space<vmem>>, vector<16x128xf32>,
    return
  }
  func.func @transform_0(%arg0: i32) -> i32 {
    %c0_i32 = arith.constant 0 : i32
    %c0_i32_0 = arith.constant 0 : i32
    return %c0_i32 : i32
  }
  func.func @transform_1(%arg0: i32) -> (i32, i32) {
    %c0_i32 = arith.constant 0 : i32
    %c0_i32_0 = arith.constant 0 : i32
    return %arg0, %c0_i32 : i32, i32
  }
  func.func @transform_2(%arg0: i32) -> (i32, i32) {
    %c0_i32 = arith.constant 0 : i32
    %c0_i32_0 = arith.constant 0 : i32
    return %arg0, %c0_i32 : i32, i32
  }
}

</mosaic_0001>

<bundles_post_ra>
// kernel: tpu_custom_call.1
= control target key start
LH: loop header
LB: loop body
LE: loop exit
PB: predicated region body
PF: predicated region fallthrough
CT: control target
= control target key end

     0   :  { %7 = vsyncpa [#allocation5], 0  ;;  %s184_s0 = inlined_call_operand.hbm [shape: f32[2], index: 0, kind: input, shape index: {}]   ;;  %s185_s1 = inlined_call_operand.hbm [shape: f32[16,128], index: 1, kind: input, shape index: {}]   ;;  %s186_s2 = inlined_call_operand.hbm [shape: f32[16,128], index: 2, kind: output, shape index: {}]  }
   0x1   :  { %8 = vsyncpa [#allocation3], 0 }
   0x2   :  { %9 = vsyncpa [#allocation4], 0  ;;  %s149_s9 = smov [#allocation2]   ;;  %s150_s12 = smov [#allocation6]  }
   0x3   :  { %17 = dma.hbm_to_smem %s184_s0, 16, %s149_s9, [#allocation5]  }
   0x4   :  { %s23_s13 = sshll.u32 %s150_s12, 4  ;;  %s24_s13 = int_to_ptr.vmem [resolvable:$true] %s23_s13 }
   0x5   :  { %s111_s14 = scalar_lea.vmem %s24_s13, 256  ;;  %p116_p1 = scmp.lt.s32.totalorder %s24_s13, %s24_s13 }
   0x6   :  { %p112_p0 = scmp.ne.s32.totalorder %s24_s13, %s111_s14  ;;  %p117_p2 = scmp.lt.s32.totalorder %s111_s14, %s111_s14 }
   0x8   :  { %p118_p3 = por %p117_p2, %p116_p1 }
   0xa   :  { %p119_p4 = pnand %p118_p3, %p112_p0 }
   0xc   :  { %122 = shalt.err (!%p119_p4)
}
   0xd   :  { %s151_s15 = smov 128   ;;  %s152_s16 = smov 8  }
   0xe   :  { %29 = dma.hbm_to_vmem [thread:$0]  %s185_s1, 256, %s24_s13, [#allocation3], %s151_s15, %s151_s15, %s152_s16  }
   0xf   :  { %143 = dma.done.wait [#allocation5], 16  }
  0x10   :  { %144 = vsyncadd [#allocation5], 4294967280 }
  0x11   :  { %145 = dma.done.wait [#allocation3], 256  }
  0x12   :  { %146 = vsyncadd [#allocation3], 4294967040 }
  0x13   :  { %36 = sfence }
  0x14   :  { %s37_s0 = sld [smem:[#allocation2]]  ;;  %v39_v0 = vld [vmem:[#allocation6] sm:$0xff]  ;;  %v40_v1 = vld [vmem:[#allocation6 + $0x8] sm:$0xff]  ;;  %s153_s1 = smov [#allocation7]  }
  0x15   :  { %s73_s19 = sld [smem:[#allocation2 + $0x1]]  ;;  %s60_s20 = sshll.u32 %s153_s1, 4  ;;  %s61_s20 = int_to_ptr.vmem [resolvable:$true] %s60_s20 }
  0x16   :  { %s123_s21 = scalar_lea.vmem %s61_s20, 256  ;;  %p128_p6 = scmp.lt.s32.totalorder %s61_s20, %s61_s20 }
  0x17   :  { %p124_p5 = scmp.ne.s32.totalorder %s61_s20, %s123_s21  ;;  %p129_p7 = scmp.lt.s32.totalorder %s123_s21, %s123_s21 }
  0x19   :  { %p130_p8 = por %p129_p7, %p128_p6 }
  0x1a   :  { %v41_v2 = vstv %s37_s0 }
  0x1b   :  { %v42_v3 = vmul.f32 %v41_v2, %v39_v0  ;;  %v43_v4 = vmul.f32 %v41_v2, %v40_v1  ;;  %v50_v20 = vstv %s73_s19  ;;  %p131_p9 = pnand %p130_p8, %p124_p5 }
  0x1d   :  { %v44_v5 = vmax.f32 %v42_v3, 0.0  ;;  %v45_v6 = vmax.f32 %v43_v4, 0.0 }
  0x1f   :  { %v46_v7 = vmin.f32 %v44_v5, 127.0  ;;  %v47_v8 = vmin.f32 %v45_v6, 127.0 }
  0x21   :  { %v76_v9 = vcvt.f32.s32 %v46_v7  ;;  %v74_v10 = vand.u32 2147483647, %v46_v7  ;;  %v84_v11 = vcvt.f32.s32 %v47_v8  ;;  %v79_v13 = vand.u32 2147483648, %v46_v7 }
  0x22   :  { %v82_v14 = vand.u32 2147483647, %v47_v8  ;;  %v87_v16 = vand.u32 2147483648, %v47_v8 }
  0x23   :  { %v77_v12 = vcvt.s32.f32 %v76_v9  ;;  %v85_v15 = vcvt.s32.f32 %v84_v11  ;;  %vm75_vm0 = vcmp.lt.f32.partialorder %v74_v10, 8388608.0 }
  0x24   :  { %vm83_vm1 = vcmp.lt.f32.partialorder %v82_v14, 8388608.0 }
  0x25   :  { %v78_v17 = vand.u32 2147483647, %v77_v12  ;;  %v86_v18 = vand.u32 2147483647, %v85_v15 }
  0x27   :  { %v80_v19 = vor.u32 %v79_v13, %v78_v17  ;;  %v88_v21 = vor.u32 %v87_v16, %v86_v18 }
  0x29   :  { %v81_v22 = vsel %vm75_vm0, %v80_v19, %v46_v7  ;;  %v89_v24 = vsel %vm83_vm1, %v88_v21, %v47_v8 }
  0x2a   :  { %v51_v23 = vmul.f32 %v81_v22, %v50_v20  ;;  %v52_v25 = vmul.f32 %v89_v24, %v50_v20 }
  0x2c   :  { %53 = vst [vmem:[#allocation7] sm:$0xff] %v51_v23  ;;  %54 = vst [vmem:[#allocation7 + $0x8] sm:$0xff] %v52_v25 }
  0x2d   :  { %134 = shalt.err (!%p131_p9)
}
  0x2e   :  { %66 = dma.vmem_to_hbm [thread:$0]  %s61_s20, 256, %s186_s2, [#allocation4], %s151_s15, %s151_s15, %s152_s16  }
  0x2f   :  { %147 = dma.done.wait [#allocation4], 256  }
  0x30   :  { %148 = vsyncadd [#allocation4], 4294967040 }
  0x31   :  { %70 = vsyncpa [#allocation3], 1 }
  0x32   :  { %71 = vsyncpa [#allocation4], 1 }
  0x33   :  { %72 = vsyncpa [#allocation5], 1 }

</bundles_post_ra>
